<compile_context>
chip_gen: v5e
topology: v5e:2x2
jax: 0.10.0
libtpu: 0.0.40
codegen_flags: <defaults>
</compile_context>

<pallas_src>
import functools

import jax
import jax.numpy as jnp
from jax import lax
from jax.experimental import pallas as pl
from jax.experimental.pallas import tpu as pltpu

_VMEM_LIMIT = 32 * 1024 * 1024  # explicit scoped-VMEM budget, safe on v5e/v6e/v7x


# ----------------------------------------------------------------------------
# helpers
# ----------------------------------------------------------------------------
def _round_up(x, m):
    return (x + m - 1) // m * m


def _node_tiling(n, max_tile=256):
    """Return (n_pad, tile): tile is a multiple of 8 dividing n_pad, tile <= max_tile."""
    n8 = _round_up(max(n, 8), 8)
    t = (min(max_tile, n8) // 8) * 8
    while t >= 64:
        if n8 % t == 0:
            return n8, t
        t -= 8
    if n8 <= max_tile:
        return n8, n8
    return _round_up(n8, max_tile), max_tile


# ----------------------------------------------------------------------------
# Pallas kernels
# ----------------------------------------------------------------------------
def _proj_kernel(x_ref, wa_ref, wz_ref, a_ref, z_ref):
    """a = x @ Wa (f32 out), z = x @ Wz (bf16 out); bf16 MXU feed, f32 accumulation."""
    x = x_ref[...].astype(jnp.bfloat16)
    a_ref[...] = jnp.dot(x, wa_ref[...], preferred_element_type=jnp.float32)
    z_ref[...] = jnp.dot(x, wz_ref[...],
                         preferred_element_type=jnp.float32).astype(jnp.bfloat16)


def _pdist_kernel(x_ref, y_ref, xn2_ref, yn2_ref, d_ref):
    """Squared pairwise distances between a row tile of x and a column tile of y."""
    xb = x_ref[0].astype(jnp.bfloat16)
    yb = y_ref[0].astype(jnp.bfloat16)
    gram = lax.dot_general(xb, yb, (((1,), (1,)), ((), ())),
                           preferred_element_type=jnp.float32)
    d_ref[0] = xn2_ref[0] + yn2_ref[0] - 2.0 * gram


def _make_combine_kernel(residual, k):
    """out = relu(a + shift + max_k z_j)  (+ x if residual), running max over K."""
    def kernel(*refs):
        if residual:
            a_ref, zj_ref, shift_ref, xres_ref, o_ref = refs
        else:
            a_ref, zj_ref, shift_ref, o_ref = refs
        # bf16 neighbour loads are upcast immediately; all VPU math stays f32 (v5e-safe).
        mk = zj_ref[0, 0, :, :].astype(jnp.float32)
        for kk in range(1, k):
            mk = jnp.maximum(mk, zj_ref[0, kk, :, :].astype(jnp.float32))
        out = jnp.maximum(a_ref[0] + shift_ref[...] + mk, 0.0)
        if residual:
            out = out + xres_ref[0]
        o_ref[0] = out.astype(o_ref.dtype)
    return kernel


# ----------------------------------------------------------------------------
# Pallas wrappers
# ----------------------------------------------------------------------------
def pallas_project(x, wa, wz):
    """x: [M, Cp] f32, wa/wz: [Cp, Cop] bf16 -> (a f32 [M, Cop], z bf16 [M, Cop])."""
    m, kdim = x.shape
    cop = wa.shape[1]
    m8 = _round_up(m, 8)
    if m8 >= 1024:
        tm = 512
    elif m8 >= 512:
        tm = 256            # keep >=2 grid steps for v7x's two TensorCores
    else:
        tm = m8
    m_pad = _round_up(m8, tm)
    if m_pad != m:
        x = jnp.pad(x, ((0, m_pad - m), (0, 0)))
    a, z = pl.pallas_call(
        _proj_kernel,
        out_shape=(jax.ShapeDtypeStruct((m_pad, cop), jnp.float32),
                   jax.ShapeDtypeStruct((m_pad, cop), jnp.bfloat16)),
        grid=(m_pad // tm,),
        in_specs=[pl.BlockSpec((tm, kdim), lambda i: (i, 0)),
                  pl.BlockSpec((kdim, cop), lambda i: (0, 0)),
                  pl.BlockSpec((kdim, cop), lambda i: (0, 0))],
        out_specs=(pl.BlockSpec((tm, cop), lambda i: (i, 0)),
                   pl.BlockSpec((tm, cop), lambda i: (i, 0))),
        compiler_params=pltpu.CompilerParams(
            dimension_semantics=("parallel",),
            vmem_limit_bytes=_VMEM_LIMIT),
        cost_estimate=pl.CostEstimate(
            flops=4 * m_pad * kdim * cop,
            transcendentals=0,
            bytes_accessed=m_pad * kdim * 4 + 2 * kdim * cop * 2 + m_pad * cop * 6),
    )(x, wa, wz)
    if m_pad != m:
        a, z = a[:m], z[:m]
    return a, z


def pallas_pdist(x, y):
    """x: [B, N, C], y: [B, M, C] (f32) -> squared pairwise distances [B, N, M] (f32)."""
    b, n, c = x.shape
    m = y.shape[1]
    n_pad, tn = _node_tiling(n)
    tm = min(256, _round_up(m, 128))
    m_pad = _round_up(m, tm)
    if n_pad != n:
        x = jnp.pad(x, ((0, 0), (0, n_pad - n), (0, 0)))
    if m_pad != m:
        y = jnp.pad(y, ((0, 0), (0, m_pad - m), (0, 0)))
    xn2 = jnp.sum(x * x, axis=-1, keepdims=True)            # [B, n_pad, 1] f32
    yn2 = jnp.sum(y * y, axis=-1)[:, None, :]                # [B, 1, m_pad] f32 (once per batch)
    d = pl.pallas_call(
        _pdist_kernel,
        out_shape=jax.ShapeDtypeStruct((b, n_pad, m_pad), jnp.float32),
        grid=(b, n_pad // tn, m_pad // tm),
        in_specs=[pl.BlockSpec((1, tn, c), lambda bb, i, j: (bb, i, 0)),
                  pl.BlockSpec((1, tm, c), lambda bb, i, j: (bb, j, 0)),
                  pl.BlockSpec((1, tn, 1), lambda bb, i, j: (bb, i, 0)),
                  pl.BlockSpec((1, 1, tm), lambda bb, i, j: (bb, 0, j))],
        out_specs=pl.BlockSpec((1, tn, tm), lambda bb, i, j: (bb, i, j)),
        compiler_params=pltpu.CompilerParams(
            dimension_semantics=("parallel", "parallel", "parallel"),
            vmem_limit_bytes=_VMEM_LIMIT),
        cost_estimate=pl.CostEstimate(
            flops=2 * b * n_pad * m_pad * c,
            transcendentals=0,
            bytes_accessed=4 * (b * n_pad * c + b * m_pad * c + b * n_pad * m_pad)),
    )(x, y, xn2, yn2)
    return d[:, :n, :m]


def pallas_edge_conv(x, idx_kn, w, scale, shift, *, residual):
    """EdgeConv with folded eval-mode BatchNorm + ReLU + neighbour max (+ residual).

    x:      [B, N, Cp] f32; only the first w.shape[0]//2 channels are meaningful, the
            rest are zero lane padding (features stay lane-padded across blocks).
    idx_kn: [B, K, N] int32 neighbour indices (neighbour-major layout).
    w:      [2*Cin, Cout] conv weights (rows = [Wi; Wj]); scale/shift: [Cout] folded BN.
    returns [B, N, Cop] f32, Cop = round_up(Cout, 128); channels >= Cout are zero.
    """
    b, n, c_phys = x.shape
    k = idx_kn.shape[1]
    cin = w.shape[0] // 2
    cout = w.shape[1]
    cop = _round_up(cout, 128)
    cp = _round_up(max(c_phys, cin), 128)

    # BN scale folded into the weights; lane-padded factors.
    scale = scale.astype(jnp.float32)
    wi, wj = w[:cin].astype(jnp.float32), w[cin:].astype(jnp.float32)
    wa = jnp.zeros((cp, cop), jnp.float32).at[:cin, :cout].set(
        (wi - wj) * scale[None, :]).astype(jnp.bfloat16)
    wz = jnp.zeros((cp, cop), jnp.float32).at[:cin, :cout].set(
        wj * scale[None, :]).astype(jnp.bfloat16)
    shift_p = jnp.zeros((1, cop), jnp.float32).at[0, :cout].set(
        shift.astype(jnp.float32))

    xin = x if c_phys == cp else jnp.pad(x, ((0, 0), (0, 0), (0, cp - c_phys)))

    # One flattened-batch MXU projection (f32 read, in-kernel bf16 cast, f32 accumulate).
    a, z = pallas_project(xin.reshape(b * n, cp), wa, wz)
    a = a.reshape(b, n, cop)
    z = z.reshape(b, n, cop)

    # Gather the *projected* neighbour features in bf16, neighbour-major layout.
    # TODO(synk): replace this XLA gather with an in-kernel gather on a VMEM-resident z.
    zj = jax.vmap(lambda zb, ib: zb[ib])(z, idx_kn)           # [B, K, N, cop] bf16

    n_pad, tn = _node_tiling(n)
    if n_pad != n:  # decoder pre-pads N, so this only triggers for standalone use
        a = jnp.pad(a, ((0, 0), (0, n_pad - n), (0, 0)))
        zj = jnp.pad(zj, ((0, 0), (0, 0), (0, n_pad - n), (0, 0)))
        if residual:
            xin = jnp.pad(xin, ((0, 0), (0, n_pad - n), (0, 0)))

    args = [a, zj, shift_p]
    in_specs = [pl.BlockSpec((1, tn, cop), lambda bb, i: (bb, i, 0)),
                pl.BlockSpec((1, k, tn, cop), lambda bb, i: (bb, 0, i, 0)),
                pl.BlockSpec((1, cop), lambda bb, i: (0, 0))]
    if residual:
        if xin.shape[-1] >= cop:
            xres = xin[..., :cop]        # alias of the previous block's padded output
        else:
            xres = jnp.pad(xin, ((0, 0), (0, 0), (0, cop - xin.shape[-1])))
        args.append(xres)
        in_specs.append(pl.BlockSpec((1, tn, cop), lambda bb, i: (bb, i, 0)))

    out = pl.pallas_call(
        _make_combine_kernel(residual, k),
        out_shape=jax.ShapeDtypeStruct((b, n_pad, cop), jnp.float32),
        grid=(b, n_pad // tn),
        in_specs=in_specs,
        out_specs=pl.BlockSpec((1, tn, cop), lambda bb, i: (bb, i, 0)),
        compiler_params=pltpu.CompilerParams(
            dimension_semantics=("parallel", "parallel"),
            vmem_limit_bytes=_VMEM_LIMIT),
        cost_estimate=pl.CostEstimate(
            flops=2 * b * n_pad * k * cop,
            transcendentals=0,
            bytes_accessed=b * n_pad * cop * (4 * (3 if residual else 2) + 2 * k)),
    )(*args)
    return out[:, :n] if n_pad != n else out


# ----------------------------------------------------------------------------
# graph utilities (glue)
# ----------------------------------------------------------------------------
def knn_indices(x, k):
    """kNN graph on node features, self-loops excluded; neighbour-major [B, K, N]."""
    d = pallas_pdist(x, x)                                   # Pallas pairwise distances
    n = d.shape[1]
    d = d + jnp.eye(n, dtype=d.dtype)[None] * 1e30           # mask self
    _, idx = lax.top_k(-d, k)                                # TODO(synk): top-k stays in XLA
    return jnp.swapaxes(idx.astype(jnp.int32), 1, 2)         # [B, K, N]


def graph_upsample(sub_feat, graph_feat, m):
    """GraphUpSamplingLayer: each graph node takes the feature of its nearest subgraph node.
    Subgraph nodes are assumed to be the first `m` graph nodes (encoder's subsample rule).
    TODO(synk): exact GraphUpSamplingLayer rule is not in the provided source."""
    d = pallas_pdist(graph_feat, graph_feat[:, :m, :])       # [B, N, M]
    nn_idx = jnp.argmin(d, axis=-1).astype(jnp.int32)        # [B, N]
    return jax.vmap(lambda sb, ib: sb[ib])(sub_feat, nn_idx)  # [B, N, Cs]


# ----------------------------------------------------------------------------
# Parameter construction (deterministic, synthetic)
# ----------------------------------------------------------------------------
def init_edgeconv_params(key, cin, cout):
    k1, k2, k3, k4 = jax.random.split(key, 4)
    w = jax.random.normal(k1, (2 * cin, cout), jnp.float32) / jnp.sqrt(2.0 * cin)
    bias = 0.01 * jax.random.normal(k2, (cout,), jnp.float32)
    gamma = 1.0 + 0.1 * jax.random.normal(k3, (cout,), jnp.float32)
    beta = 0.1 * jax.random.normal(k4, (cout,), jnp.float32)
    # eval-mode BN (running_mean=0, running_var=1) folded with the conv bias.
    eps = 1e-5
    s = gamma / jnp.sqrt(1.0 + eps)
    return {"w": w, "scale": s, "shift": bias * s + beta}


def init_decoder_gcn_params(key, in_channels, out_channels, blocks, out=None):
    mix_out = out if out is not None else out_channels
    keys = jax.random.split(key, blocks)
    return {
        "mix": init_edgeconv_params(keys[0], in_channels + out_channels, mix_out),
        "blocks": [init_edgeconv_params(keys[i], mix_out, mix_out)
                   for i in range(1, blocks)],
    }


# ----------------------------------------------------------------------------
# DecoderGCN forward
# ----------------------------------------------------------------------------
def decoder_gcn_forward(sub_x_nchw, graph_x_nchw, params, *, k):
    """sub_x: [B, Cs, M, 1], graph_x: [B, Cg, N, 1] (PyTorch layout).
    Returns graph.x in PyTorch layout [B, Cout, N, 1]."""
    gx = jnp.transpose(graph_x_nchw[..., 0], (0, 2, 1)).astype(jnp.float32)   # [B, N, Cg]
    sx = jnp.transpose(sub_x_nchw[..., 0], (0, 2, 1)).astype(jnp.float32)     # [B, M, Cs]
    b, n, _ = gx.shape
    m = sx.shape[1]

    # --- GraphUpSamplingLayer: subgraph -> full-resolution graph ---
    feat_sub = graph_upsample(sx, gx, m)                     # [B, N, Cs]
    # --- torch.cat([graph.x, feature_sub], dim=1): channel concat ---
    feat = jnp.concatenate([gx, feat_sub], axis=-1)          # [B, N, Cg + Cs]

    # fixed knn graph on the full-resolution node features, reused by all conv blocks.
    # TODO(synk): original code reuses graph.edge_index (built from positions); knn on
    #             graph.x is used here since positions are not part of the spec.
    idx_kn = knn_indices(gx, k)                              # [B, K, N]

    # pad the node axis once; features stay lane-padded [B, n_pad, Cop] across all blocks.
    n_pad, _ = _node_tiling(n)
    if n_pad != n:
        feat = jnp.pad(feat, ((0, 0), (0, n_pad - n), (0, 0)))
        idx_kn = jnp.pad(idx_kn, ((0, 0), (0, 0), (0, n_pad - n)))

    # --- feature_mix: EdgeConv (Cg+Cs -> Cout) ---
    mix = params["mix"]
    feat = pallas_edge_conv(feat, idx_kn, mix["w"], mix["scale"], mix["shift"],
                            residual=False)

    # --- inference: ResGCN with (blocks-1) residual EdgeConv blocks ---
    for blk in params["blocks"]:
        feat = pallas_edge_conv(feat, idx_kn, blk["w"], blk["scale"], blk["shift"],
                                residual=True)

    cout = params["mix"]["w"].shape[1]
    feat = feat[:, :n, :cout]                                # single slice at the very end
    return jnp.transpose(feat, (0, 2, 1))[..., None]         # back to [B, Cout, N, 1]


# ----------------------------------------------------------------------------
if __name__ == "__main__":
    B, IN_CH, OUT_CH = 2, 4, 32          # graph.x channels / subgraph.x (= mix output) channels
    N, M = 16, 8                         # graph nodes / subgraph nodes
    K, BLOCKS = 4, 3                     # knn neighbours / DecoderGCN blocks (=> 2 residual)

    key = jax.random.PRNGKey(0)
    k_g, k_s, k_p = jax.random.split(key, 3)
    graph_x = jax.random.normal(k_g, (B, IN_CH, N, 1), jnp.float32)   # graph.x (NCHW)
    sub_x = jax.random.normal(k_s, (B, OUT_CH, M, 1), jnp.float32)    # subgraph.x (NCHW)
    params = init_decoder_gcn_params(k_p, IN_CH, OUT_CH, BLOCKS)

    fwd = functools.partial(decoder_gcn_forward, k=K)
    out = jax.jit(fwd)(sub_x, graph_x, params)
    out = jax.block_until_ready(out)
    assert out.shape == (B, OUT_CH, N, 1), out.shape
    assert bool(jnp.all(jnp.isfinite(out)))
    print("KERNEL_OK")
</pallas_src>

<mosaic_0001>
module attributes {stable_mosaic.version = 11 : i64} {
  func.func @_pdist_kernel(%arg0: i32, %arg1: i32, %arg2: i32, %arg3: memref<1x16x4xf32, #tpu.memory_space<vmem>>, %arg4: memref<1x128x4xf32, #tpu.memory_space<vmem>>, %arg5: memref<1x16x1xf32, #tpu.memory_space<vmem>>, %arg6: memref<1x1x128xf32, #tpu.memory_space<vmem>>, %arg7: memref<1x16x128xf32, #tpu.memory_space<vmem>>) attributes {dimension_semantics = [#tpu.dimension_semantics<parallel>, #tpu.dimension_semantics<parallel>, #tpu.dimension_semantics<parallel>], iteration_bounds = array<i64: 2, 1, 1>, scalar_prefetch = 0 : i64, scratch_operands = 0 : i64, tpu.core_type = #tpu.core_type<tc>, window_params = [{transform_indices = @transform_0, window_bounds = array<i64: 1, 16, 4>}, {transform_indices = @transform_1, window_bounds = array<i64: 1, 128, 4>}, {transform_indices = @transform_2, window_bounds = array<i64: 1, 16, 1>}, {transform_indices = @transform_3, window_bounds = array<i64: 1, 1, 128>}, {transform_indices = @transform_4, window_bounds = array<i64: 1, 16, 128>}]} {
    %c0 = arith.constant 0 : index
    %c0_0 = arith.constant 0 : index
    %c0_1 = arith.constant 0 : index
    %0 = vector.load %arg3[%c0, %c0_0, %c0_1] : memref<1x16x4xf32, #tpu.memory_space<vmem>>, vector<1x16x4xf32>
    %1 = vector.shape_cast %0 : vector<1x16x4xf32> to vector<16x4xf32>
    %2 = arith.truncf %1 : vector<16x4xf32> to vector<16x4xbf16>
    %c0_2 = arith.constant 0 : index
    %c0_3 = arith.constant 0 : index
    %c0_4 = arith.constant 0 : index
    %3 = vector.load %arg4[%c0_2, %c0_3, %c0_4] : memref<1x128x4xf32, #tpu.memory_space<vmem>>, vector<1x128x4xf32>
    %4 = vector.shape_cast %3 : vector<1x128x4xf32> to vector<128x4xf32>
    %5 = arith.truncf %4 : vector<128x4xf32> to vector<128x4xbf16>
    %cst = arith.constant dense<0.000000e+00> : vector<16x128xf32>
    %6 = tpu.matmul %2, %5, %cst {dimension_numbers = #tpu.dot_dimension_numbers<[1], [1], [0], [0], [0, 0, 1, 0], [], []>} : vector<16x4xbf16>, vector<128x4xbf16>, vector<16x128xf32> -> vector<16x128xf32>
    %c0_5 = arith.constant 0 : index
    %c0_6 = arith.constant 0 : index
    %c0_7 = arith.constant 0 : index
    %7 = vector.load %arg5[%c0_5, %c0_6, %c0_7] : memref<1x16x1xf32, #tpu.memory_space<vmem>>, vector<1x16x1xf32>
    %8 = vector.shape_cast %7 : vector<1x16x1xf32> to vector<16x1xf32>
    %c0_8 = arith.constant 0 : index
    %c0_9 = arith.constant 0 : index
    %c0_10 = arith.constant 0 : index
    %9 = vector.load %arg6[%c0_8, %c0_9, %c0_10] : memref<1x1x128xf32, #tpu.memory_space<vmem>>, vector<1x1x128xf32>
    %10 = vector.shape_cast %9 : vector<1x1x128xf32> to vector<1x128xf32>
    %11 = vector.broadcast %8 : vector<16x1xf32> to vector<16x128xf32>
    %12 = vector.broadcast %10 : vector<1x128xf32> to vector<16x128xf32>
    %13 = arith.addf %11, %12 : vector<16x128xf32>
    %cst_11 = arith.constant 2.000000e+00 : f32
    %14 = vector.broadcast %cst_11 : f32 to vector<16x128xf32>
    %15 = arith.mulf %14, %6 : vector<16x128xf32>
    %16 = arith.subf %13, %15 : vector<16x128xf32>
    %c0_12 = arith.constant 0 : index
    %c0_13 = arith.constant 0 : index
    %c0_14 = arith.constant 0 : index
    %17 = vector.load %arg7[%c0_12, %c0_13, %c0_14] : memref<1x16x128xf32, #tpu.memory_space<vmem>>, vector<1x16x128xf32>
    %18 = vector.shape_cast %17 : vector<1x16x128xf32> to vector<16x128xf32>
    %19 = vector.shape_cast %16 : vector<16x128xf32> to vector<1x16x128xf32>
    tpu.vector_store %arg7[%c0_12, %c0_13, %c0_14], %19 {strides = array<i32>} : memref<1x16x128xf32, #tpu.memory_space<vmem>>, vector<1x16x128xf32>,
    return
  }
  func.func @transform_0(%arg0: i32, %arg1: i32, %arg2: i32) -> (i32, i32, i32) {
    %c0_i32 = arith.constant 0 : i32
    %c0_i32_0 = arith.constant 0 : i32
    return %arg0, %arg1, %c0_i32 : i32, i32, i32
  }
  func.func @transform_1(%arg0: i32, %arg1: i32, %arg2: i32) -> (i32, i32, i32) {
    %c0_i32 = arith.constant 0 : i32
    %c0_i32_0 = arith.constant 0 : i32
    return %arg0, %arg2, %c0_i32 : i32, i32, i32
  }
  func.func @transform_2(%arg0: i32, %arg1: i32, %arg2: i32) -> (i32, i32, i32) {
    %c0_i32 = arith.constant 0 : i32
    %c0_i32_0 = arith.constant 0 : i32
    return %arg0, %arg1, %c0_i32 : i32, i32, i32
  }
  func.func @transform_3(%arg0: i32, %arg1: i32, %arg2: i32) -> (i32, i32, i32) {
    %c0_i32 = arith.constant 0 : i32
    %c0_i32_0 = arith.constant 0 : i32
    return %arg0, %c0_i32, %arg2 : i32, i32, i32
  }
  func.func @transform_4(%arg0: i32, %arg1: i32, %arg2: i32) -> (i32, i32, i32) {
    %c0_i32 = arith.constant 0 : i32
    return %arg0, %arg1, %arg2 : i32, i32, i32
  }
}

module attributes {stable_mosaic.version = 11 : i64} {
  func.func @_proj_kernel(%arg0: i32, %arg1: memref<32x128xf32, #tpu.memory_space<vmem>>, %arg2: memref<128x128xbf16, #tpu.memory_space<vmem>>, %arg3: memref<128x128xbf16, #tpu.memory_space<vmem>>, %arg4: memref<32x128xf32, #tpu.memory_space<vmem>>, %arg5: memref<32x128xbf16, #tpu.memory_space<vmem>>) attributes {dimension_semantics = [#tpu.dimension_semantics<parallel>], iteration_bounds = array<i64: 1>, scalar_prefetch = 0 : i64, scratch_operands = 0 : i64, tpu.core_type = #tpu.core_type<tc>, window_params = [{transform_indices = @transform_0, window_bounds = array<i64: 32, 128>}, {pipeline_mode = #tpu.pipeline_mode<synchronous>, transform_indices = @transform_1, window_bounds = array<i64: 128, 128>}, {pipeline_mode = #tpu.pipeline_mode<synchronous>, transform_indices = @transform_2, window_bounds = array<i64: 128, 128>}, {transform_indices = @transform_3, window_bounds = array<i64: 32, 128>}, {transform_indices = @transform_4, window_bounds = array<i64: 32, 128>}]} {
    %c0 = arith.constant 0 : index
    %c0_0 = arith.constant 0 : index
    %0 = vector.load %arg1[%c0, %c0_0] : memref<32x128xf32, #tpu.memory_space<vmem>>, vector<32x128xf32>
    %1 = arith.truncf %0 : vector<32x128xf32> to vector<32x128xbf16>
    %c0_1 = arith.constant 0 : index
    %c0_2 = arith.constant 0 : index
    %2 = vector.load %arg2[%c0_1, %c0_2] : memref<128x128xbf16, #tpu.memory_space<vmem>>, vector<128x128xbf16>
    %cst = arith.constant dense<0.000000e+00> : vector<32x128xf32>
    %3 = tpu.matmul %1, %2, %cst {dimension_numbers = #tpu.dot_dimension_numbers<[1], [0], [0], [1], [0, 0, 1, 1], [], []>} : vector<32x128xbf16>, vector<128x128xbf16>, vector<32x128xf32> -> vector<32x128xf32>
    %c0_3 = arith.constant 0 : index
    %c0_4 = arith.constant 0 : index
    %4 = vector.load %arg4[%c0_3, %c0_4] : memref<32x128xf32, #tpu.memory_space<vmem>>, vector<32x128xf32>
    tpu.vector_store %arg4[%c0_3, %c0_4], %3 {strides = array<i32>} : memref<32x128xf32, #tpu.memory_space<vmem>>, vector<32x128xf32>,
    %c0_5 = arith.constant 0 : index
    %c0_6 = arith.constant 0 : index
    %5 = vector.load %arg3[%c0_5, %c0_6] : memref<128x128xbf16, #tpu.memory_space<vmem>>, vector<128x128xbf16>
    %cst_7 = arith.constant dense<0.000000e+00> : vector<32x128xf32>
    %6 = tpu.matmul %1, %5, %cst_7 {dimension_numbers = #tpu.dot_dimension_numbers<[1], [0], [0], [1], [0, 0, 1, 1], [], []>} : vector<32x128xbf16>, vector<128x128xbf16>, vector<32x128xf32> -> vector<32x128xf32>
    %7 = arith.truncf %6 : vector<32x128xf32> to vector<32x128xbf16>
    %c0_8 = arith.constant 0 : index
    %c0_9 = arith.constant 0 : index
    %8 = vector.load %arg5[%c0_8, %c0_9] : memref<32x128xbf16, #tpu.memory_space<vmem>>, vector<32x128xbf16>
    tpu.vector_store %arg5[%c0_8, %c0_9], %7 {strides = array<i32>} : memref<32x128xbf16, #tpu.memory_space<vmem>>, vector<32x128xbf16>,
    return
  }
  func.func @transform_0(%arg0: i32) -> (i32, i32) {
    %c0_i32 = arith.constant 0 : i32
    %c0_i32_0 = arith.constant 0 : i32
    return %arg0, %c0_i32 : i32, i32
  }
  func.func @transform_1(%arg0: i32) -> (i32, i32) {
    %c0_i32 = arith.constant 0 : i32
    %c0_i32_0 = arith.constant 0 : i32
    %c0_i32_1 = arith.constant 0 : i32
    return %c0_i32, %c0_i32_0 : i32, i32
  }
  func.func @transform_2(%arg0: i32) -> (i32, i32) {
    %c0_i32 = arith.constant 0 : i32
    %c0_i32_0 = arith.constant 0 : i32
    %c0_i32_1 = arith.constant 0 : i32
    return %c0_i32, %c0_i32_0 : i32, i32
  }
  func.func @transform_3(%arg0: i32) -> (i32, i32) {
    %c0_i32 = arith.constant 0 : i32
    %c0_i32_0 = arith.constant 0 : i32
    return %arg0, %c0_i32 : i32, i32
  }
  func.func @transform_4(%arg0: i32) -> (i32, i32) {
    %c0_i32 = arith.constant 0 : i32
    %c0_i32_0 = arith.constant 0 : i32
    return %arg0, %c0_i32 : i32, i32
  }
}

module attributes {stable_mosaic.version = 11 : i64} {
  func.func @kernel(%arg0: i32, %arg1: i32, %arg2: memref<1x16x128xf32, #tpu.memory_space<vmem>>, %arg3: memref<1x4x16x128xbf16, #tpu.memory_space<vmem>>, %arg4: memref<1x128xf32, #tpu.memory_space<vmem>>, %arg5: memref<1x16x128xf32, #tpu.memory_space<vmem>>) attributes {dimension_semantics = [#tpu.dimension_semantics<parallel>, #tpu.dimension_semantics<parallel>], iteration_bounds = array<i64: 2, 1>, scalar_prefetch = 0 : i64, scratch_operands = 0 : i64, tpu.core_type = #tpu.core_type<tc>, window_params = [{transform_indices = @transform_0, window_bounds = array<i64: 1, 16, 128>}, {transform_indices = @transform_1, window_bounds = array<i64: 1, 4, 16, 128>}, {pipeline_mode = #tpu.pipeline_mode<synchronous>, transform_indices = @transform_2, window_bounds = array<i64: 1, 128>}, {transform_indices = @transform_3, window_bounds = array<i64: 1, 16, 128>}]} {
    %c0 = arith.constant 0 : index
    %c0_0 = arith.constant 0 : index
    %c0_1 = arith.constant 0 : index
    %c0_2 = arith.constant 0 : index
    %0 = vector.load %arg3[%c0, %c0_0, %c0_1, %c0_2] : memref<1x4x16x128xbf16, #tpu.memory_space<vmem>>, vector<1x1x16x128xbf16>
    %1 = vector.shape_cast %0 : vector<1x1x16x128xbf16> to vector<16x128xbf16>
    %2 = arith.extf %1 : vector<16x128xbf16> to vector<16x128xf32>
    %c0_3 = arith.constant 0 : index
    %c1 = arith.constant 1 : index
    %c0_4 = arith.constant 0 : index
    %c0_5 = arith.constant 0 : index
    %3 = vector.load %arg3[%c0_3, %c1, %c0_4, %c0_5] : memref<1x4x16x128xbf16, #tpu.memory_space<vmem>>, vector<1x1x16x128xbf16>
    %4 = vector.shape_cast %3 : vector<1x1x16x128xbf16> to vector<16x128xbf16>
    %5 = arith.extf %4 : vector<16x128xbf16> to vector<16x128xf32>
    %6 = arith.maximumf %2, %5 : vector<16x128xf32>
    %c0_6 = arith.constant 0 : index
    %c2 = arith.constant 2 : index
    %c0_7 = arith.constant 0 : index
    %c0_8 = arith.constant 0 : index
    %7 = vector.load %arg3[%c0_6, %c2, %c0_7, %c0_8] : memref<1x4x16x128xbf16, #tpu.memory_space<vmem>>, vector<1x1x16x128xbf16>
    %8 = vector.shape_cast %7 : vector<1x1x16x128xbf16> to vector<16x128xbf16>
    %9 = arith.extf %8 : vector<16x128xbf16> to vector<16x128xf32>
    %10 = arith.maximumf %6, %9 : vector<16x128xf32>
    %c0_9 = arith.constant 0 : index
    %c3 = arith.constant 3 : index
    %c0_10 = arith.constant 0 : index
    %c0_11 = arith.constant 0 : index
    %11 = vector.load %arg3[%c0_9, %c3, %c0_10, %c0_11] : memref<1x4x16x128xbf16, #tpu.memory_space<vmem>>, vector<1x1x16x128xbf16>
    %12 = vector.shape_cast %11 : vector<1x1x16x128xbf16> to vector<16x128xbf16>
    %13 = arith.extf %12 : vector<16x128xbf16> to vector<16x128xf32>
    %14 = arith.maximumf %10, %13 : vector<16x128xf32>
    %c0_12 = arith.constant 0 : index
    %c0_13 = arith.constant 0 : index
    %c0_14 = arith.constant 0 : index
    %15 = vector.load %arg2[%c0_12, %c0_13, %c0_14] : memref<1x16x128xf32, #tpu.memory_space<vmem>>, vector<1x16x128xf32>
    %16 = vector.shape_cast %15 : vector<1x16x128xf32> to vector<16x128xf32>
    %c0_15 = arith.constant 0 : index
    %c0_16 = arith.constant 0 : index
    %17 = vector.load %arg4[%c0_15, %c0_16] : memref<1x128xf32, #tpu.memory_space<vmem>>, vector<1x128xf32>
    %18 = vector.broadcast %17 : vector<1x128xf32> to vector<16x128xf32>
    %19 = arith.addf %16, %18 : vector<16x128xf32>
    %20 = arith.addf %19, %14 : vector<16x128xf32>
    %cst = arith.constant 0.000000e+00 : f32
    %21 = vector.broadcast %cst : f32 to vector<16x128xf32>
    %22 = arith.maximumf %20, %21 : vector<16x128xf32>
    %c0_17 = arith.constant 0 : index
    %c0_18 = arith.constant 0 : index
    %c0_19 = arith.constant 0 : index
    %23 = vector.load %arg5[%c0_17, %c0_18, %c0_19] : memref<1x16x128xf32, #tpu.memory_space<vmem>>, vector<1x16x128xf32>
    %24 = vector.shape_cast %23 : vector<1x16x128xf32> to vector<16x128xf32>
    %25 = vector.shape_cast %22 : vector<16x128xf32> to vector<1x16x128xf32>
    tpu.vector_store %arg5[%c0_17, %c0_18, %c0_19], %25 {strides = array<i32>} : memref<1x16x128xf32, #tpu.memory_space<vmem>>, vector<1x16x128xf32>,
    return
  }
  func.func @transform_0(%arg0: i32, %arg1: i32) -> (i32, i32, i32) {
    %c0_i32 = arith.constant 0 : i32
    %c0_i32_0 = arith.constant 0 : i32
    return %arg0, %arg1, %c0_i32 : i32, i32, i32
  }
  func.func @transform_1(%arg0: i32, %arg1: i32) -> (i32, i32, i32, i32) {
    %c0_i32 = arith.constant 0 : i32
    %c0_i32_0 = arith.constant 0 : i32
    %c0_i32_1 = arith.constant 0 : i32
    return %arg0, %c0_i32, %arg1, %c0_i32_0 : i32, i32, i32, i32
  }
  func.func @transform_2(%arg0: i32, %arg1: i32) -> (i32, i32) {
    %c0_i32 = arith.constant 0 : i32
    %c0_i32_0 = arith.constant 0 : i32
    %c0_i32_1 = arith.constant 0 : i32
    return %c0_i32, %c0_i32_0 : i32, i32
  }
  func.func @transform_3(%arg0: i32, %arg1: i32) -> (i32, i32, i32) {
    %c0_i32 = arith.constant 0 : i32
    %c0_i32_0 = arith.constant 0 : i32
    return %arg0, %arg1, %c0_i32 : i32, i32, i32
  }
}

module attributes {stable_mosaic.version = 11 : i64} {
  func.func @kernel(%arg0: i32, %arg1: i32, %arg2: memref<1x16x128xf32, #tpu.memory_space<vmem>>, %arg3: memref<1x4x16x128xbf16, #tpu.memory_space<vmem>>, %arg4: memref<1x128xf32, #tpu.memory_space<vmem>>, %arg5: memref<1x16x128xf32, #tpu.memory_space<vmem>>, %arg6: memref<1x16x128xf32, #tpu.memory_space<vmem>>) attributes {dimension_semantics = [#tpu.dimension_semantics<parallel>, #tpu.dimension_semantics<parallel>], iteration_bounds = array<i64: 2, 1>, scalar_prefetch = 0 : i64, scratch_operands = 0 : i64, tpu.core_type = #tpu.core_type<tc>, window_params = [{transform_indices = @transform_0, window_bounds = array<i64: 1, 16, 128>}, {transform_indices = @transform_1, window_bounds = array<i64: 1, 4, 16, 128>}, {pipeline_mode = #tpu.pipeline_mode<synchronous>, transform_indices = @transform_2, window_bounds = array<i64: 1, 128>}, {transform_indices = @transform_3, window_bounds = array<i64: 1, 16, 128>}, {transform_indices = @transform_4, window_bounds = array<i64: 1, 16, 128>}]} {
    %c0 = arith.constant 0 : index
    %c0_0 = arith.constant 0 : index
    %c0_1 = arith.constant 0 : index
    %c0_2 = arith.constant 0 : index
    %0 = vector.load %arg3[%c0, %c0_0, %c0_1, %c0_2] : memref<1x4x16x128xbf16, #tpu.memory_space<vmem>>, vector<1x1x16x128xbf16>
    %1 = vector.shape_cast %0 : vector<1x1x16x128xbf16> to vector<16x128xbf16>
    %2 = arith.extf %1 : vector<16x128xbf16> to vector<16x128xf32>
    %c0_3 = arith.constant 0 : index
    %c1 = arith.constant 1 : index
    %c0_4 = arith.constant 0 : index
    %c0_5 = arith.constant 0 : index
    %3 = vector.load %arg3[%c0_3, %c1, %c0_4, %c0_5] : memref<1x4x16x128xbf16, #tpu.memory_space<vmem>>, vector<1x1x16x128xbf16>
    %4 = vector.shape_cast %3 : vector<1x1x16x128xbf16> to vector<16x128xbf16>
    %5 = arith.extf %4 : vector<16x128xbf16> to vector<16x128xf32>
    %6 = arith.maximumf %2, %5 : vector<16x128xf32>
    %c0_6 = arith.constant 0 : index
    %c2 = arith.constant 2 : index
    %c0_7 = arith.constant 0 : index
    %c0_8 = arith.constant 0 : index
    %7 = vector.load %arg3[%c0_6, %c2, %c0_7, %c0_8] : memref<1x4x16x128xbf16, #tpu.memory_space<vmem>>, vector<1x1x16x128xbf16>
    %8 = vector.shape_cast %7 : vector<1x1x16x128xbf16> to vector<16x128xbf16>
    %9 = arith.extf %8 : vector<16x128xbf16> to vector<16x128xf32>
    %10 = arith.maximumf %6, %9 : vector<16x128xf32>
    %c0_9 = arith.constant 0 : index
    %c3 = arith.constant 3 : index
    %c0_10 = arith.constant 0 : index
    %c0_11 = arith.constant 0 : index
    %11 = vector.load %arg3[%c0_9, %c3, %c0_10, %c0_11] : memref<1x4x16x128xbf16, #tpu.memory_space<vmem>>, vector<1x1x16x128xbf16>
    %12 = vector.shape_cast %11 : vector<1x1x16x128xbf16> to vector<16x128xbf16>
    %13 = arith.extf %12 : vector<16x128xbf16> to vector<16x128xf32>
    %14 = arith.maximumf %10, %13 : vector<16x128xf32>
    %c0_12 = arith.constant 0 : index
    %c0_13 = arith.constant 0 : index
    %c0_14 = arith.constant 0 : index
    %15 = vector.load %arg2[%c0_12, %c0_13, %c0_14] : memref<1x16x128xf32, #tpu.memory_space<vmem>>, vector<1x16x128xf32>
    %16 = vector.shape_cast %15 : vector<1x16x128xf32> to vector<16x128xf32>
    %c0_15 = arith.constant 0 : index
    %c0_16 = arith.constant 0 : index
    %17 = vector.load %arg4[%c0_15, %c0_16] : memref<1x128xf32, #tpu.memory_space<vmem>>, vector<1x128xf32>
    %18 = vector.broadcast %17 : vector<1x128xf32> to vector<16x128xf32>
    %19 = arith.addf %16, %18 : vector<16x128xf32>
    %20 = arith.addf %19, %14 : vector<16x128xf32>
    %cst = arith.constant 0.000000e+00 : f32
    %21 = vector.broadcast %cst : f32 to vector<16x128xf32>
    %22 = arith.maximumf %20, %21 : vector<16x128xf32>
    %c0_17 = arith.constant 0 : index
    %c0_18 = arith.constant 0 : index
    %c0_19 = arith.constant 0 : index
    %23 = vector.load %arg5[%c0_17, %c0_18, %c0_19] : memref<1x16x128xf32, #tpu.memory_space<vmem>>, vector<1x16x128xf32>
    %24 = vector.shape_cast %23 : vector<1x16x128xf32> to vector<16x128xf32>
    %25 = arith.addf %22, %24 : vector<16x128xf32>
    %c0_20 = arith.constant 0 : index
    %c0_21 = arith.constant 0 : index
    %c0_22 = arith.constant 0 : index
    %26 = vector.load %arg6[%c0_20, %c0_21, %c0_22] : memref<1x16x128xf32, #tpu.memory_space<vmem>>, vector<1x16x128xf32>
    %27 = vector.shape_cast %26 : vector<1x16x128xf32> to vector<16x128xf32>
    %28 = vector.shape_cast %25 : vector<16x128xf32> to vector<1x16x128xf32>
    tpu.vector_store %arg6[%c0_20, %c0_21, %c0_22], %28 {strides = array<i32>} : memref<1x16x128xf32, #tpu.memory_space<vmem>>, vector<1x16x128xf32>,
    return
  }
  func.func @transform_0(%arg0: i32, %arg1: i32) -> (i32, i32, i32) {
    %c0_i32 = arith.constant 0 : i32
    %c0_i32_0 = arith.constant 0 : i32
    return %arg0, %arg1, %c0_i32 : i32, i32, i32
  }
  func.func @transform_1(%arg0: i32, %arg1: i32) -> (i32, i32, i32, i32) {
    %c0_i32 = arith.constant 0 : i32
    %c0_i32_0 = arith.constant 0 : i32
    %c0_i32_1 = arith.constant 0 : i32
    return %arg0, %c0_i32, %arg1, %c0_i32_0 : i32, i32, i32, i32
  }
  func.func @transform_2(%arg0: i32, %arg1: i32) -> (i32, i32) {
    %c0_i32 = arith.constant 0 : i32
    %c0_i32_0 = arith.constant 0 : i32
    %c0_i32_1 = arith.constant 0 : i32
    return %c0_i32, %c0_i32_0 : i32, i32
  }
  func.func @transform_3(%arg0: i32, %arg1: i32) -> (i32, i32, i32) {
    %c0_i32 = arith.constant 0 : i32
    %c0_i32_0 = arith.constant 0 : i32
    return %arg0, %arg1, %c0_i32 : i32, i32, i32
  }
  func.func @transform_4(%arg0: i32, %arg1: i32) -> (i32, i32, i32) {
    %c0_i32 = arith.constant 0 : i32
    %c0_i32_0 = arith.constant 0 : i32
    return %arg0, %arg1, %c0_i32 : i32, i32, i32
  }
}

module attributes {stable_mosaic.version = 11 : i64} {
  func.func @kernel(%arg0: i32, %arg1: i32, %arg2: memref<1x16x128xf32, #tpu.memory_space<vmem>>, %arg3: memref<1x4x16x128xbf16, #tpu.memory_space<vmem>>, %arg4: memref<1x128xf32, #tpu.memory_space<vmem>>, %arg5: memref<1x16x128xf32, #tpu.memory_space<vmem>>, %arg6: memref<1x16x128xf32, #tpu.memory_space<vmem>>) attributes {dimension_semantics = [#tpu.dimension_semantics<parallel>, #tpu.dimension_semantics<parallel>], iteration_bounds = array<i64: 2, 1>, scalar_prefetch = 0 : i64, scratch_operands = 0 : i64, tpu.core_type = #tpu.core_type<tc>, window_params = [{transform_indices = @transform_0, window_bounds = array<i64: 1, 16, 128>}, {transform_indices = @transform_1, window_bounds = array<i64: 1, 4, 16, 128>}, {pipeline_mode = #tpu.pipeline_mode<synchronous>, transform_indices = @transform_2, window_bounds = array<i64: 1, 128>}, {transform_indices = @transform_3, window_bounds = array<i64: 1, 16, 128>}, {transform_indices = @transform_4, window_bounds = array<i64: 1, 16, 128>}]} {
    %c0 = arith.constant 0 : index
    %c0_0 = arith.constant 0 : index
    %c0_1 = arith.constant 0 : index
    %c0_2 = arith.constant 0 : index
    %0 = vector.load %arg3[%c0, %c0_0, %c0_1, %c0_2] : memref<1x4x16x128xbf16, #tpu.memory_space<vmem>>, vector<1x1x16x128xbf16>
    %1 = vector.shape_cast %0 : vector<1x1x16x128xbf16> to vector<16x128xbf16>
    %2 = arith.extf %1 : vector<16x128xbf16> to vector<16x128xf32>
    %c0_3 = arith.constant 0 : index
    %c1 = arith.constant 1 : index
    %c0_4 = arith.constant 0 : index
    %c0_5 = arith.constant 0 : index
    %3 = vector.load %arg3[%c0_3, %c1, %c0_4, %c0_5] : memref<1x4x16x128xbf16, #tpu.memory_space<vmem>>, vector<1x1x16x128xbf16>
    %4 = vector.shape_cast %3 : vector<1x1x16x128xbf16> to vector<16x128xbf16>
    %5 = arith.extf %4 : vector<16x128xbf16> to vector<16x128xf32>
    %6 = arith.maximumf %2, %5 : vector<16x128xf32>
    %c0_6 = arith.constant 0 : index
    %c2 = arith.constant 2 : index
    %c0_7 = arith.constant 0 : index
    %c0_8 = arith.constant 0 : index
    %7 = vector.load %arg3[%c0_6, %c2, %c0_7, %c0_8] : memref<1x4x16x128xbf16, #tpu.memory_space<vmem>>, vector<1x1x16x128xbf16>
    %8 = vector.shape_cast %7 : vector<1x1x16x128xbf16> to vector<16x128xbf16>
    %9 = arith.extf %8 : vector<16x128xbf16> to vector<16x128xf32>
    %10 = arith.maximumf %6, %9 : vector<16x128xf32>
    %c0_9 = arith.constant 0 : index
    %c3 = arith.constant 3 : index
    %c0_10 = arith.constant 0 : index
    %c0_11 = arith.constant 0 : index
    %11 = vector.load %arg3[%c0_9, %c3, %c0_10, %c0_11] : memref<1x4x16x128xbf16, #tpu.memory_space<vmem>>, vector<1x1x16x128xbf16>
    %12 = vector.shape_cast %11 : vector<1x1x16x128xbf16> to vector<16x128xbf16>
    %13 = arith.extf %12 : vector<16x128xbf16> to vector<16x128xf32>
    %14 = arith.maximumf %10, %13 : vector<16x128xf32>
    %c0_12 = arith.constant 0 : index
    %c0_13 = arith.constant 0 : index
    %c0_14 = arith.constant 0 : index
    %15 = vector.load %arg2[%c0_12, %c0_13, %c0_14] : memref<1x16x128xf32, #tpu.memory_space<vmem>>, vector<1x16x128xf32>
    %16 = vector.shape_cast %15 : vector<1x16x128xf32> to vector<16x128xf32>
    %c0_15 = arith.constant 0 : index
    %c0_16 = arith.constant 0 : index
    %17 = vector.load %arg4[%c0_15, %c0_16] : memref<1x128xf32, #tpu.memory_space<vmem>>, vector<1x128xf32>
    %18 = vector.broadcast %17 : vector<1x128xf32> to vector<16x128xf32>
    %19 = arith.addf %16, %18 : vector<16x128xf32>
    %20 = arith.addf %19, %14 : vector<16x128xf32>
    %cst = arith.constant 0.000000e+00 : f32
    %21 = vector.broadcast %cst : f32 to vector<16x128xf32>
    %22 = arith.maximumf %20, %21 : vector<16x128xf32>
    %c0_17 = arith.constant 0 : index
    %c0_18 = arith.constant 0 : index
    %c0_19 = arith.constant 0 : index
    %23 = vector.load %arg5[%c0_17, %c0_18, %c0_19] : memref<1x16x128xf32, #tpu.memory_space<vmem>>, vector<1x16x128xf32>
    %24 = vector.shape_cast %23 : vector<1x16x128xf32> to vector<16x128xf32>
    %25 = arith.addf %22, %24 : vector<16x128xf32>
    %c0_20 = arith.constant 0 : index
    %c0_21 = arith.constant 0 : index
    %c0_22 = arith.constant 0 : index
    %26 = vector.load %arg6[%c0_20, %c0_21, %c0_22] : memref<1x16x128xf32, #tpu.memory_space<vmem>>, vector<1x16x128xf32>
    %27 = vector.shape_cast %26 : vector<1x16x128xf32> to vector<16x128xf32>
    %28 = vector.shape_cast %25 : vector<16x128xf32> to vector<1x16x128xf32>
    tpu.vector_store %arg6[%c0_20, %c0_21, %c0_22], %28 {strides = array<i32>} : memref<1x16x128xf32, #tpu.memory_space<vmem>>, vector<1x16x128xf32>,
    return
  }
  func.func @transform_0(%arg0: i32, %arg1: i32) -> (i32, i32, i32) {
    %c0_i32 = arith.constant 0 : i32
    %c0_i32_0 = arith.constant 0 : i32
    return %arg0, %arg1, %c0_i32 : i32, i32, i32
  }
  func.func @transform_1(%arg0: i32, %arg1: i32) -> (i32, i32, i32, i32) {
    %c0_i32 = arith.constant 0 : i32
    %c0_i32_0 = arith.constant 0 : i32
    %c0_i32_1 = arith.constant 0 : i32
    return %arg0, %c0_i32, %arg1, %c0_i32_0 : i32, i32, i32, i32
  }
  func.func @transform_2(%arg0: i32, %arg1: i32) -> (i32, i32) {
    %c0_i32 = arith.constant 0 : i32
    %c0_i32_0 = arith.constant 0 : i32
    %c0_i32_1 = arith.constant 0 : i32
    return %c0_i32, %c0_i32_0 : i32, i32
  }
  func.func @transform_3(%arg0: i32, %arg1: i32) -> (i32, i32, i32) {
    %c0_i32 = arith.constant 0 : i32
    %c0_i32_0 = arith.constant 0 : i32
    return %arg0, %arg1, %c0_i32 : i32, i32, i32
  }
  func.func @transform_4(%arg0: i32, %arg1: i32) -> (i32, i32, i32) {
    %c0_i32 = arith.constant 0 : i32
    %c0_i32_0 = arith.constant 0 : i32
    return %arg0, %arg1, %c0_i32 : i32, i32, i32
  }
}

</mosaic_0001>

<bundles_post_ra>
// kernel: decoder_gcn_forward.8
= control target key start
LH: loop header
LB: loop body
LE: loop exit
PB: predicated region body
PF: predicated region fallthrough
CT: control target
= control target key end

     0   :  { %s687_s15 = smov 0   ;;  %s689_s16 = smov 0   ;;  %s771_s0 = inlined_call_operand.vmem [shape: f32[2,16,4], index: 0, kind: input, shape index: {}]   ;;  %s772_s1 = inlined_call_operand.vmem [shape: f32[2,128,4], index: 1, kind: input, shape index: {}]   ;;  %s773_s2 = inlined_call_operand.vmem [shape: f32[2,16,1], index: 2, kind: input, shape index: {}]   ;;  %s774_s3 = inlined_call_operand.vmem [shape: f32[2,1,128], index: 3, kind: input, shape index: {}]   ;;  %s775_s4 = inlined_call_operand.vmem [shape: f32[2,16,128], index: 4, kind: output, shape index: {}]  }
   0x1   :  { %s691_s17 = smov 0  }
   0x2 LB: > { %s33_s18 = sadd.s32 1, %s655_s16  ;;  %p594_p0 = scmp.ge.s32.totalorder %s659_s17, 1  ;;  %s659_s17 = sphi %s691_s17, %s14_s17   ;;  %s655_s16 = sphi %s689_s16, %s777_s16   ;;  %s651_s15 = sphi %s687_s15, %s776_s15  }
   0x3   : > { %p35_p1 = scmp.ge.s32.totalorder %s33_s18, 2  ;;  %p239_p2 = scmp.lt.s32.totalorder %s659_s17, 3 }
   0x5   : > { %s779_s18 = smov (%p35_p1, %s33_s18), 0  ;;  %p240_p3 = pnand %p594_p0, %p239_p2 }
   0x6   : > { %p301_p4 = scmp.lt.s32.totalorder (!%p240_p3), %s651_s15, 1 }
   0x7   : > { %243 = sbr.rel (%p240_p3) target bundleno = 221 (0xdd), region = 36 }
   0xc   : > { %s781_s15 = smov (!%p301_p4, %s651_s15), 1  ;;  %vm376_vm0 = vcmask 31744   ;;  %v661_v23 = vmov 0  }
   0xd   : > { %s607_s19 = sshll.u32 %s781_s15, 7  ;;  %s335_s25 = scalar_lea.vmem %s774_s3, %s781_s15  ;;  %635 = vset.pattern.permute.xlu0 %v661_v23 }
   0xe   : > { %s711_s22 = scalar_lea.vmem %s772_s1, %s607_s19  ;;  %s732_s26 = sshll.u32 %s781_s15, 4  ;;  %v636_v38 = vld [vmem:[%s335_s25] ss:$0 sm:$0xff] }
   0xf   : > { %v366_v0 = vld [vmem:[%s711_s22 + $0x70] sm:$0xff]  ;;  %v367_v1 = vld [vmem:[%s711_s22 + $0x78] sm:$0xff]  ;;  %v364_v3 = vld [vmem:[%s711_s22 + $0x60] sm:$0xff]  ;;  %s328_s29 = scalar_lea.vmem %s773_s2, %s732_s26  ;;  %s308_s6 = scalar_lea.vmem %s771_s0, %s732_s26 }
  0x10   : > { %v375_v2 = vpack.c.bf16 %v367_v1, %v366_v0  ;;  %v365_v4 = vld [vmem:[%s711_s22 + $0x68] sm:$0xff]  ;;  %v362_v8 = vld [vmem:[%s711_s22 + $0x50] sm:$0xff]  ;;  %v363_v9 = vld [vmem:[%s711_s22 + $0x58] sm:$0xff]  ;;  %s347_s11 = scalar_lea.vmem %s775_s4, %s732_s26 }
  0x11   : > { %v374_v6 = vpack.c.bf16 %v365_v4, %v364_v3  ;;  %v373_v10 = vpack.c.bf16 %v363_v9, %v362_v8  ;;  %v360_v12 = vld [vmem:[%s711_s22 + $0x40] sm:$0xff]  ;;  %v361_v13 = vld [vmem:[%s711_s22 + $0x48] sm:$0xff]  ;;  %v358_v16 = vld [vmem:[%s711_s22 + $0x30] sm:$0xff] }
  0x12   : > { %v402_v5 = vsel %vm376_vm0, %v375_v2, 0  ;;  %v372_v14 = vpack.c.bf16 %v361_v13, %v360_v12  ;;  %v359_v17 = vld [vmem:[%s711_s22 + $0x38] sm:$0xff]  ;;  %v356_v20 = vld [vmem:[%s711_s22 + $0x20] sm:$0xff]  ;;  %v357_v21 = vld [vmem:[%s711_s22 + $0x28] sm:$0xff] }
  0x13   : > { %404 = vmatpush.bf16.xpose.msra.mxu0 %v402_v5  ;;  %v399_v7 = vsel %vm376_vm0, %v374_v6, 0  ;;  %v396_v11 = vsel %vm376_vm0, %v373_v10, 0  ;;  %v371_v18 = vpack.c.bf16 %v359_v17, %v358_v16  ;;  %v418_v22 = vld [vmem:[%s328_s29] sm:$0xff]  ;;  %v370_v24 = vpack.c.bf16 %v357_v21, %v356_v20  ;;  %v354_v26 = vld [vmem:[%s711_s22 + $0x10] sm:$0xff]  ;;  %v355_v27 = vld [vmem:[%s711_s22 + $0x18] sm:$0xff] }
  0x14   : > { %v393_v15 = vsel %vm376_vm0, %v372_v14, 0  ;;  %423 = vperm.xlu0 %635, %v418_v22   ;;  %v419_v28 = vld [vmem:[%s328_s29 + $0x8] sm:$0xff]  ;;  %v369_v29 = vpack.c.bf16 %v355_v27, %v354_v26  ;;  %v352_v31 = vld [vmem:[%s711_s22] sm:$0xff] }
  0x15   : > { %v390_v19 = vsel %vm376_vm0, %v371_v18, 0  ;;  %v387_v25 = vsel %vm376_vm0, %v370_v24, 0  ;;  %v353_v32 = vld [vmem:[%s711_s22 + $0x8] sm:$0xff]  ;;  %v349_v35 = vld [vmem:[%s308_s6] sm:$0xff] }
  0x16   : > { %v384_v30 = vsel %vm376_vm0, %v369_v29, 0  ;;  %v368_v33 = vpack.c.bf16 %v353_v32, %v352_v31  ;;  %v350_v36 = vld [vmem:[%s308_s6 + $0x8] sm:$0xff] }
  0x17   : > { %v351_v37 = vpack.c.bf16 %v350_v36, %v349_v35 }
  0x18   : > { %v381_v34 = vsel %vm376_vm0, %v368_v33, 0 }
  0x1b   : > { %405 = vmatpush.bf16.xpose.msra.mxu0 %v399_v7 }
  0x1c   : > { %428 = vperm.xlu0 %635, %v419_v28  }
  0x23   : > { %406 = vmatpush.bf16.xpose.msra.mxu0 %v396_v11 }
  0x2b   : > { %407 = vmatpush.bf16.xpose.msra.mxu0 %v393_v15 }
  0x33   : > { %408 = vmatpush.bf16.xpose.msra.mxu0 %v390_v19 }
  0x3b   : > { %409 = vmatpush.bf16.xpose.msra.mxu0 %v387_v25 }
  0x43   : > { %410 = vmatpush.bf16.xpose.msra.mxu0 %v384_v30 }
  0x4b   : > { %411 = vmatpush.bf16.xpose.msra.mxu0 %v381_v34 }
  0x52   : > { %603 = vmatmul.msk.bf16.vlgmr.msra.gmra.mxu0 %vm376_vm0, %v351_v37 }
  0x86   : > { %v424_v39 = vpop.permute.xlu0 %423 }
  0x87   : > { %v434_v40 = vadd.f32 %v636_v38, %v424_v39 }
  0x8e   : > { %v429_v44 = vpop.permute.xlu0 %428 }
  0x8f   : > { %v435_v46 = vadd.f32 %v636_v38, %v429_v44 }
  0xcf   : > { %v413_v41 = vpop.f32.mrf.mxu0 }
  0xd0   : > { %v436_v42 = vmul.f32 2.0, %v413_v41 }
  0xd2   : > { %v438_v43 = vsub.f32 %v434_v40, %v436_v42 }
  0xd4   : > { %440 = vst [vmem:[%s347_s11] sm:$0xff] %v438_v43 }
  0xd7   : > { %v415_v45 = vpop.f32.mrf.mxu0 }
  0xd8   : > { %v437_v47 = vmul.f32 2.0, %v415_v45 }
  0xda   : > { %v439_v48 = vsub.f32 %v435_v46, %v437_v47 }
  0xdc   : > { %441 = vst [vmem:[%s347_s11 + $0x8] sm:$0xff] %v439_v48 }
  0xdd PF: > { %s14_s17 = sadd.s32 1, %s659_s17   ;;  %s776_s15 = smov %s655_s16 }
  0xde   : > { %p11_p5 = scmp.ge.s32.totalorder %s14_s17, 4   ;;  %s777_s16 = smov %s779_s18 }
  0xe0   :  { %13 = sbr.rel (!%p11_p5) target bundleno = 2 (0x2), region = 75 }

// kernel: decoder_gcn_forward.10
= control target key start
LH: loop header
LB: loop body
LE: loop exit
PB: predicated region body
PF: predicated region fallthrough
CT: control target
= control target key end

     0   :  { %s418_s1 = inlined_call_operand.vmem [shape: bf16[128,128], index: 1, kind: input, shape index: {}]   ;;  %s419_s2 = inlined_call_operand.vmem [shape: bf16[128,128], index: 2, kind: input, shape index: {}]   ;;  %s420_s0 = inlined_call_operand.vmem [shape: f32[32,128], index: 0, kind: input, shape index: {}]   ;;  %s421_s3 = inlined_call_operand.vmem [shape: f32[32,128], index: 3, kind: output, shape index: {0}]   ;;  %s422_s4 = inlined_call_operand.vmem [shape: bf16[32,128], index: 4, kind: output, shape index: {1}]  }
   0x1   :  { %v279_v0 = vld [vmem:[%s418_s1 + $0x38] sm:$0xff]  ;;  %v278_v2 = vld [vmem:[%s418_s1 + $0x30] sm:$0xff]  ;;  %v277_v4 = vld [vmem:[%s418_s1 + $0x28] sm:$0xff] }
   0x2   :  { %v287_v1 = vld [vmem:[%s419_s2 + $0x38] sm:$0xff]  ;;  %86 = vmatpush.bf16.msra.mxu0 %v279_v0  ;;  %299 = vmatpush.bf16.msra.mxu2 %v279_v0  ;;  %v286_v3 = vld [vmem:[%s419_s2 + $0x30] sm:$0xff]  ;;  %v285_v5 = vld [vmem:[%s419_s2 + $0x28] sm:$0xff] }
   0x3   :  { %173 = vmatpush.bf16.msra.mxu1 %v287_v1  ;;  %307 = vmatpush.bf16.msra.mxu3 %v287_v1  ;;  %v276_v6 = vld [vmem:[%s418_s1 + $0x20] sm:$0xff]  ;;  %v275_v8 = vld [vmem:[%s418_s1 + $0x18] sm:$0xff]  ;;  %v274_v10 = vld [vmem:[%s418_s1 + $0x10] sm:$0xff] }
   0x4   :  { %v284_v7 = vld [vmem:[%s419_s2 + $0x20] sm:$0xff]  ;;  %v283_v9 = vld [vmem:[%s419_s2 + $0x18] sm:$0xff]  ;;  %v282_v11 = vld [vmem:[%s419_s2 + $0x10] sm:$0xff] }
   0x5   :  { %v273_v12 = vld [vmem:[%s418_s1 + $0x8] sm:$0xff]  ;;  %v272_v14 = vld [vmem:[%s418_s1] sm:$0xff]  ;;  %v18_v17 = vld [vmem:[%s420_s0 + $0x10] sm:$0xff] }
   0x6   :  { %87 = vmatpush.bf16.msra.mxu0 %v278_v2  ;;  %300 = vmatpush.bf16.msra.mxu2 %v278_v2  ;;  %v281_v13 = vld [vmem:[%s419_s2 + $0x8] sm:$0xff]  ;;  %v16_v15 = vld [vmem:[%s420_s0] sm:$0xff]  ;;  %v19_v18 = vld [vmem:[%s420_s0 + $0x18] sm:$0xff] }
   0x7   :  { %174 = vmatpush.bf16.msra.mxu1 %v286_v3  ;;  %308 = vmatpush.bf16.msra.mxu3 %v286_v3  ;;  %v17_v16 = vld [vmem:[%s420_s0 + $0x8] sm:$0xff]  ;;  %v280_v19 = vld [vmem:[%s419_s2] sm:$0xff]  ;;  %v21_v21 = vpack.c.bf16 %v19_v18, %v18_v17 }
   0x8   :  { %v20_v20 = vpack.c.bf16 %v17_v16, %v16_v15 }
   0xa   :  { %88 = vmatpush.bf16.msra.mxu0 %v277_v4  ;;  %301 = vmatpush.bf16.msra.mxu2 %v277_v4 }
   0xb   :  { %175 = vmatpush.bf16.msra.mxu1 %v285_v5  ;;  %309 = vmatpush.bf16.msra.mxu3 %v285_v5 }
   0xe   :  { %89 = vmatpush.bf16.msra.mxu0 %v276_v6  ;;  %302 = vmatpush.bf16.msra.mxu2 %v276_v6 }
   0xf   :  { %176 = vmatpush.bf16.msra.mxu1 %v284_v7  ;;  %310 = vmatpush.bf16.msra.mxu3 %v284_v7 }
  0x12   :  { %90 = vmatpush.bf16.msra.mxu0 %v275_v8  ;;  %303 = vmatpush.bf16.msra.mxu2 %v275_v8 }
  0x13   :  { %177 = vmatpush.bf16.msra.mxu1 %v283_v9  ;;  %311 = vmatpush.bf16.msra.mxu3 %v283_v9 }
  0x16   :  { %91 = vmatpush.bf16.msra.mxu0 %v274_v10  ;;  %304 = vmatpush.bf16.msra.mxu2 %v274_v10 }
  0x17   :  { %178 = vmatpush.bf16.msra.mxu1 %v282_v11  ;;  %312 = vmatpush.bf16.msra.mxu3 %v282_v11 }
  0x1a   :  { %92 = vmatpush.bf16.msra.mxu0 %v273_v12  ;;  %305 = vmatpush.bf16.msra.mxu2 %v273_v12 }
  0x1b   :  { %179 = vmatpush.bf16.msra.mxu1 %v281_v13  ;;  %313 = vmatpush.bf16.msra.mxu3 %v281_v13 }
  0x1e   :  { %93 = vmatpush.bf16.msra.mxu0 %v272_v14  ;;  %306 = vmatpush.bf16.msra.mxu2 %v272_v14 }
  0x1f   :  { %180 = vmatpush.bf16.msra.mxu1 %v280_v19  ;;  %314 = vmatpush.bf16.msra.mxu3 %v280_v19 }
  0x21   :  { %94 = vmatmul.bf16.vlgmr.msra.gmra.mxu0 %v20_v20  ;;  %99 = vmatmul.bf16.vlgmr.msra.gmra.mxu2 %v21_v21 }
  0x22   :  { %181 = vmatmul.bf16.vlgmr.msra.gmra.mxu1 %v20_v20  ;;  %186 = vmatmul.bf16.vlgmr.msra.gmra.mxu3 %v21_v21 }
  0x9e   :  { %v95_v22 = vpop.f32.mrf.mxu0 }
  0x9f   :  { %105 = vst [vmem:[%s421_s3] sm:$0xff] %v95_v22  ;;  %v182_v23 = vpop.f32.mrf.mxu1 }
  0xa4   :  { %v100_v24 = vpop.f32.mrf.mxu2 }
  0xa5   :  { %107 = vst [vmem:[%s421_s3 + $0x10] sm:$0xff] %v100_v24  ;;  %v187_v25 = vpop.f32.mrf.mxu3 }
  0xa6   :  { %v97_v26 = vpop.f32.mrf.mxu0 }
  0xa7   :  { %106 = vst [vmem:[%s421_s3 + $0x8] sm:$0xff] %v97_v26  ;;  %v184_v27 = vpop.f32.mrf.mxu1 }
  0xa8   :  { %v291_v28 = vpack.c.bf16 %v184_v27, %v182_v23 }
  0xaa   :  { %292 = vst [vmem:[%s422_s4] sm:$0xff] %v291_v28  }
  0xac   :  { %v102_v29 = vpop.f32.mrf.mxu2 }
  0xad   :  { %108 = vst [vmem:[%s421_s3 + $0x18] sm:$0xff] %v102_v29  ;;  %v189_v30 = vpop.f32.mrf.mxu3 }
  0xae   :  { %v296_v31 = vpack.c.bf16 %v189_v30, %v187_v25 }
  0xb0   :  { %298 = vst [vmem:[%s422_s4 + $0x8] sm:$0xff] %v296_v31  }

// kernel: decoder_gcn_forward.11
= control target key start
LH: loop header
LB: loop body
LE: loop exit
PB: predicated region body
PF: predicated region fallthrough
CT: control target
= control target key end

     0   :  { %s500_s12 = smov 0   ;;  %s502_s13 = smov 0   ;;  %s543_s0 = inlined_call_operand.vmem [shape: f32[2,16,128], index: 0, kind: input, shape index: {}]   ;;  %s544_s1 = inlined_call_operand.vmem [shape: bf16[2,4,16,128], index: 1, kind: input, shape index: {}]   ;;  %s545_s2 = inlined_call_operand.vmem [shape: f32[1,128], index: 2, kind: input, shape index: {}]   ;;  %s546_s3 = inlined_call_operand.vmem [shape: f32[2,16,128], index: 3, kind: output, shape index: {}]  }
   0x1   :  { %s504_s14 = smov 0  }
   0x2 LB: > { %s25_s15 = sadd.s32 1, %s474_s13  ;;  %p394_p0 = scmp.ge.s32.totalorder %s478_s14, 1  ;;  %s478_s14 = sphi %s504_s14, %s13_s14   ;;  %s474_s13 = sphi %s502_s13, %s548_s13   ;;  %s470_s12 = sphi %s500_s12, %s547_s12  }
   0x3   : > { %p27_p1 = scmp.ge.s32.totalorder %s25_s15, 2  ;;  %p175_p2 = scmp.lt.s32.totalorder %s478_s14, 3 }
   0x5   : > { %s550_s15 = smov (%p27_p1, %s25_s15), 0  ;;  %p176_p3 = pnand %p394_p0, %p175_p2 }
   0x6   : > { %p217_p4 = scmp.lt.s32.totalorder (!%p176_p3), %s470_s12, 1 }
   0x7   : > { %179 = sbr.rel (%p176_p3) target bundleno = 30 (0x1e), region = 32 }
   0xc   : > { %s552_s12 = smov (!%p217_p4, %s470_s12), 1  ;;  %v455_v7 = vld [vmem:[%s545_s2] ss:$0 sm:$0xff] }
   0xd   : > { %s409_s16 = sshll.u32 %s552_s12, 4  ;;  %s410_s17 = sshll.u32 %s552_s12, 5 }
   0xe   : > { %s224_s20 = scalar_lea.vmem %s543_s0, %s409_s16  ;;  %s234_s23 = scalar_lea.vmem %s544_s1, %s410_s17 }
   0xf   : > { %v413_v0 = vld [vmem:[%s234_s23] sm:$0xff]   ;;  %v428_v1 = vld [vmem:[%s234_s23 + $0x8] sm:$0xff]   ;;  %v429_v2 = vld [vmem:[%s234_s23 + $0x10] sm:$0xff]   ;;  %s244_s28 = scalar_lea.vmem %s546_s3, %s409_s16 }
  0x10   : > { %v414_v3 = vunpack.c.l.bf16 %v413_v0  ;;  %v418_v4 = vunpack.c.l.bf16 %v428_v1  ;;  %v422_v5 = vunpack.c.l.bf16 %v429_v2  ;;  %v430_v6 = vld [vmem:[%s234_s23 + $0x18] sm:$0xff]   ;;  %v415_v8 = vunpack.c.h.bf16 %v413_v0  ;;  %v271_v9 = vld [vmem:[%s224_s20] sm:$0xff]  ;;  %v272_v14 = vld [vmem:[%s224_s20 + $0x8] sm:$0xff] }
  0x11   : > { %v419_v10 = vunpack.c.h.bf16 %v428_v1  ;;  %v423_v11 = vunpack.c.h.bf16 %v429_v2  ;;  %v426_v13 = vunpack.c.l.bf16 %v430_v6  ;;  %v427_v16 = vunpack.c.h.bf16 %v430_v6 }
  0x12   : > { %v255_v12 = vmax.f32 %v414_v3, %v418_v4  ;;  %v277_v18 = vadd.f32 %v455_v7, %v271_v9  ;;  %v278_v20 = vadd.f32 %v455_v7, %v272_v14 }
  0x13   : > { %v256_v15 = vmax.f32 %v415_v8, %v419_v10 }
  0x14   : > { %v262_v17 = vmax.f32 %v255_v12, %v422_v5 }
  0x15   : > { %v263_v19 = vmax.f32 %v256_v15, %v423_v11 }
  0x16   : > { %v269_v21 = vmax.f32 %v262_v17, %v426_v13 }
  0x17   : > { %v270_v22 = vmax.f32 %v263_v19, %v427_v16 }
  0x18   : > { %v279_v23 = vadd.f32 %v277_v18, %v269_v21 }
  0x19   : > { %v280_v24 = vadd.f32 %v278_v20, %v270_v22 }
  0x1a   : > { %v281_v25 = vmax.f32 %v279_v23, 0.0 }
  0x1b   : > { %v282_v26 = vmax.f32 %v280_v24, 0.0 }
  0x1c   : > { %283 = vst [vmem:[%s244_s28] sm:$0xff] %v281_v25 }
  0x1d   : > { %284 = vst [vmem:[%s244_s28 + $0x8] sm:$0xff] %v282_v26 }
  0x1e PF: > { %s13_s14 = sadd.s32 1, %s478_s14   ;;  %s547_s12 = smov %s474_s13 }
  0x1f   : > { %p10_p5 = scmp.ge.s32.totalorder %s13_s14, 4   ;;  %s548_s13 = smov %s550_s15 }
  0x21   :  { %12 = sbr.rel (!%p10_p5) target bundleno = 2 (0x2), region = 68 }

// kernel: decoder_gcn_forward.13
= control target key start
LH: loop header
LB: loop body
LE: loop exit
PB: predicated region body
PF: predicated region fallthrough
CT: control target
= control target key end

     0   :  { %s593_s15 = smov 0   ;;  %s595_s16 = smov 0   ;;  %s640_s0 = inlined_call_operand.vmem [shape: f32[2,16,128], index: 0, kind: input, shape index: {}]   ;;  %s641_s1 = inlined_call_operand.vmem [shape: bf16[2,4,16,128], index: 1, kind: input, shape index: {}]   ;;  %s642_s2 = inlined_call_operand.vmem [shape: f32[1,128], index: 2, kind: input, shape index: {}]   ;;  %s643_s3 = inlined_call_operand.vmem [shape: f32[2,16,128], index: 3, kind: input, shape index: {}]   ;;  %s644_s4 = inlined_call_operand.vmem [shape: f32[2,16,128], index: 4, kind: output, shape index: {}]  }
   0x1   :  { %s597_s17 = smov 0  }
   0x2 LB: > { %s26_s18 = sadd.s32 1, %s562_s16  ;;  %p479_p0 = scmp.ge.s32.totalorder %s566_s17, 1  ;;  %s566_s17 = sphi %s597_s17, %s14_s17   ;;  %s562_s16 = sphi %s595_s16, %s646_s16   ;;  %s558_s15 = sphi %s593_s15, %s645_s15  }
   0x3   : > { %p28_p1 = scmp.ge.s32.totalorder %s26_s18, 2  ;;  %p217_p2 = scmp.lt.s32.totalorder %s566_s17, 3 }
   0x5   : > { %s648_s18 = smov (%p28_p1, %s26_s18), 0  ;;  %p218_p3 = pnand %p479_p0, %p217_p2 }
   0x6   : > { %p270_p4 = scmp.lt.s32.totalorder (!%p218_p3), %s558_s15, 1 }
   0x7   : > { %221 = sbr.rel (%p218_p3) target bundleno = 32 (0x20), region = 36 }
   0xc   : > { %s650_s15 = smov (!%p270_p4, %s558_s15), 1  ;;  %v543_v7 = vld [vmem:[%s642_s2] ss:$0 sm:$0xff] }
   0xd   : > { %s611_s19 = sshll.u32 %s650_s15, 4  ;;  %s497_s20 = sshll.u32 %s650_s15, 5 }
   0xe   : > { %s277_s23 = scalar_lea.vmem %s640_s0, %s611_s19  ;;  %s287_s26 = scalar_lea.vmem %s641_s1, %s497_s20 }
   0xf   : > { %v501_v0 = vld [vmem:[%s287_s26] sm:$0xff]   ;;  %v516_v1 = vld [vmem:[%s287_s26 + $0x8] sm:$0xff]   ;;  %v517_v2 = vld [vmem:[%s287_s26 + $0x10] sm:$0xff]   ;;  %s297_s5 = scalar_lea.vmem %s643_s3, %s611_s19  ;;  %s307_s8 = scalar_lea.vmem %s644_s4, %s611_s19 }
  0x10   : > { %v502_v3 = vunpack.c.l.bf16 %v501_v0  ;;  %v506_v4 = vunpack.c.l.bf16 %v516_v1  ;;  %v510_v5 = vunpack.c.l.bf16 %v517_v2  ;;  %v518_v6 = vld [vmem:[%s287_s26 + $0x18] sm:$0xff]   ;;  %v503_v8 = vunpack.c.h.bf16 %v501_v0  ;;  %v334_v9 = vld [vmem:[%s277_s23] sm:$0xff]  ;;  %v335_v14 = vld [vmem:[%s277_s23 + $0x8] sm:$0xff] }
  0x11   : > { %v507_v10 = vunpack.c.h.bf16 %v516_v1  ;;  %v511_v11 = vunpack.c.h.bf16 %v517_v2  ;;  %v514_v13 = vunpack.c.l.bf16 %v518_v6  ;;  %v515_v16 = vunpack.c.h.bf16 %v518_v6  ;;  %v346_v24 = vld [vmem:[%s297_s5] sm:$0xff]  ;;  %v347_v27 = vld [vmem:[%s297_s5 + $0x8] sm:$0xff] }
  0x12   : > { %v318_v12 = vmax.f32 %v502_v3, %v506_v4  ;;  %v340_v18 = vadd.f32 %v543_v7, %v334_v9  ;;  %v341_v20 = vadd.f32 %v543_v7, %v335_v14 }
  0x13   : > { %v319_v15 = vmax.f32 %v503_v8, %v507_v10 }
  0x14   : > { %v325_v17 = vmax.f32 %v318_v12, %v510_v5 }
  0x15   : > { %v326_v19 = vmax.f32 %v319_v15, %v511_v11 }
  0x16   : > { %v332_v21 = vmax.f32 %v325_v17, %v514_v13 }
  0x17   : > { %v333_v22 = vmax.f32 %v326_v19, %v515_v16 }
  0x18   : > { %v342_v23 = vadd.f32 %v340_v18, %v332_v21 }
  0x19   : > { %v343_v25 = vadd.f32 %v341_v20, %v333_v22 }
  0x1a   : > { %v344_v26 = vmax.f32 %v342_v23, 0.0 }
  0x1b   : > { %v345_v28 = vmax.f32 %v343_v25, 0.0 }
  0x1c   : > { %v348_v29 = vadd.f32 %v346_v24, %v344_v26 }
  0x1d   : > { %v349_v30 = vadd.f32 %v347_v27, %v345_v28 }
  0x1e   : > { %350 = vst [vmem:[%s307_s8] sm:$0xff] %v348_v29 }
  0x1f   : > { %351 = vst [vmem:[%s307_s8 + $0x8] sm:$0xff] %v349_v30 }
  0x20 PF: > { %s14_s17 = sadd.s32 1, %s566_s17   ;;  %s645_s15 = smov %s562_s16 }
  0x21   : > { %p11_p5 = scmp.ge.s32.totalorder %s14_s17, 4   ;;  %s646_s16 = smov %s648_s18 }
  0x23   :  { %13 = sbr.rel (!%p11_p5) target bundleno = 2 (0x2), region = 75 }

// kernel: decoder_gcn_forward.15
= control target key start
LH: loop header
LB: loop body
LE: loop exit
PB: predicated region body
PF: predicated region fallthrough
CT: control target
= control target key end

     0   :  { %9 = vsyncpa [#allocation3], 0  ;;  %s800_s0 = inlined_call_operand.vmem [shape: f32[2,16,128], index: 0, kind: input, shape index: {}]   ;;  %s801_s1 = inlined_call_operand.vmem [shape: bf16[2,4,16,128], index: 1, kind: input, shape index: {}]   ;;  %s802_s2 = inlined_call_operand.vmem [shape: f32[1,128], index: 2, kind: input, shape index: {}]   ;;  %s803_s3 = inlined_call_operand.vmem [shape: f32[2,16,128], index: 3, kind: input, shape index: {}]   ;;  %s804_s4 = inlined_call_operand.hbm [shape: f32[2,16,128], index: 4, kind: output, shape index: {}]  }
   0x1   :  { %11 = vsyncpa [#allocation3 + $0x1], 0  ;;  %s686_s15 = smov 0   ;;  %s688_s16 = smov 0  }
   0x2   :  { %s690_s17 = smov 0   ;;  %s692_s18 = smov 0  }
   0x3   :  { %s694_s19 = smov 0   ;;  %s696_s20 = smov 0  }
   0x4 LB: > { %s475_s21 = sadd.s32 4294967295, %s657_s20   ;;  %s476_s22 = sadd.s32 4294967294, %s657_s20   ;;  %s657_s20 = sphi %s696_s20, %s17_s20   ;;  %s653_s19 = sphi %s694_s19, %s811_s19   ;;  %s649_s18 = sphi %s692_s18, %s810_s18   ;;  %s645_s17 = sphi %s690_s17, %s809_s17   ;;  %s641_s16 = sphi %s688_s16, %s808_s16   ;;  %s637_s15 = sphi %s686_s15, %s807_s15  }
   0x5   : > { %s29_s23 = sadd.s32 1, %s653_s19  ;;  %s143_s24 = sadd.s32 1, %s645_s17 }
   0x6   : > { %p31_p0 = scmp.ge.s32.totalorder %s29_s23, 2  ;;  %p153_p1 = scmp.ne.s32.totalorder %s645_s17, %s641_s16 }
   0x7   : > { %p154_p2 = scmp.eq.s32.totalorder %s475_s21, 1  ;;  %p159_p3 = scmp.ne.s32.totalorder %s641_s16, %s637_s15 }
   0x8   : > { %s813_s23 = smov (%p31_p0, %s29_s23), 0  ;;  %p160_p5 = scmp.eq.s32.totalorder %s476_s22, 1 }
   0x9   : > { %p726_p4 = por %p154_p2, %p153_p1  ;;  %s138_s26 = ssub.s32 %s653_s19, %s813_s23 }
   0xa   : > { %p479_p6 = scmp.ge.s32.totalorder %s657_s20, 1  ;;  %p141_p7 = scmp.eq.s32.totalorder %s138_s26, 0 }
   0xb   : > { %p733_p8 = por %p160_p5, %p159_p3  ;;  %p220_p9 = scmp.lt.s32.totalorder %s657_s20, 3 }
   0xc   : > { %s739_s28 = scalar_select %p141_p7, %s645_s17, %s143_s24  }
   0xd   : > { %p221_p10 = pnand %p479_p6, %p220_p9 }
   0xe   : > { %p269_p11 = scmp.lt.s32.totalorder (!%p221_p10), %s649_s18, 1  ;;  %s265_s12 = sand.u32 (!%p221_p10), 1, %s641_s16  }
   0xf   : > { %224 = sbr.rel (%p221_p10) target bundleno = 44 (0x2c), region = 36  ;;  %s480_s21 = sshll.u32 (!%p221_p10), %s265_s12, 4 }
  0x10   : > { %s501_s22 = sshll.u32 (!%p221_p10), %s649_s18, 4 }
  0x11   : > { %s356_s7 = scalar_lea.hbm (!%p221_p10), %s804_s4, %s501_s22 }
  0x14   : > { %s743_s29 = scalar_select %p269_p11, %s649_s18, 1  ;;  %v578_v7 = vld [vmem:[%s802_s2] ss:$0 sm:$0xff] }
  0x15   : > { %s359_s18 = sshll.u32 %s356_s7, 4  ;;  %s360_s18 = int_to_ptr.hbm [resolvable:$true] %s359_s18 }
  0x16   : > { %s498_s30 = sshll.u32 %s743_s29, 4  ;;  %s499_s5 = sshll.u32 %s743_s29, 5 }
  0x17   : > { %s276_s8 = scalar_lea.vmem %s800_s0, %s498_s30  ;;  %s286_s11 = scalar_lea.vmem %s801_s1, %s499_s5 }
  0x18   : > { %v503_v0 = vld [vmem:[%s286_s11] sm:$0xff]   ;;  %v518_v1 = vld [vmem:[%s286_s11 + $0x8] sm:$0xff]   ;;  %v519_v2 = vld [vmem:[%s286_s11 + $0x10] sm:$0xff]   ;;  %s296_s29 = scalar_lea.vmem %s803_s3, %s498_s30  ;;  %s343_s30 = scalar_lea.sflag [#allocation3], %s265_s12 }
  0x19   : > { %v504_v3 = vunpack.c.l.bf16 %v503_v0  ;;  %v508_v4 = vunpack.c.l.bf16 %v518_v1  ;;  %v512_v5 = vunpack.c.l.bf16 %v519_v2  ;;  %v520_v6 = vld [vmem:[%s286_s11 + $0x18] sm:$0xff]   ;;  %v505_v8 = vunpack.c.h.bf16 %v503_v0  ;;  %v324_v9 = vld [vmem:[%s276_s8] sm:$0xff]  ;;  %v325_v14 = vld [vmem:[%s276_s8 + $0x8] sm:$0xff]  ;;  %s267_s8 = scalar_lea.vmem [#allocation2], %s480_s21  ;;  %s593_s10 = sshra.s32 %s360_s18, 4  ;;  %s594_s10 = int_to_ptr.hbm [resolvable:$true] %s593_s10 }
  0x1a   : > { %v509_v10 = vunpack.c.h.bf16 %v518_v1  ;;  %v513_v11 = vunpack.c.h.bf16 %v519_v2  ;;  %v516_v13 = vunpack.c.l.bf16 %v520_v6  ;;  %v517_v16 = vunpack.c.h.bf16 %v520_v6  ;;  %v336_v24 = vld [vmem:[%s296_s29] sm:$0xff]  ;;  %s357_s9 = sshll.u32 %s267_s8, 4  ;;  %v337_v27 = vld [vmem:[%s296_s29 + $0x8] sm:$0xff]  ;;  %s595_s11 = scalar_lea.hbm %s594_s10, 16  ;;  %s358_s9 = int_to_ptr.vmem [resolvable:$true] %s357_s9 }
  0x1b   : > { %v308_v12 = vmax.f32 %v504_v3, %v508_v4  ;;  %v330_v18 = vadd.f32 %v578_v7, %v324_v9  ;;  %v331_v20 = vadd.f32 %v578_v7, %v325_v14  ;;  %p596_p12 = scmp.ne.s32.totalorder %s594_s10, %s595_s11  ;;  %s599_s21 = scalar_lea.hbm %s804_s4, 32 }
  0x1c   : > { %v309_v15 = vmax.f32 %v505_v8, %v509_v10  ;;  %p600_p1 = scmp.lt.s32.totalorder %s594_s10, %s804_s4  ;;  %p601_p2 = scmp.lt.s32.totalorder %s599_s21, %s595_s11 }
  0x1d   : > { %v315_v17 = vmax.f32 %v308_v12, %v512_v5  ;;  %p597_p13 = pnand %p596_p12, %p726_p4 }
  0x1e   : > { %v316_v19 = vmax.f32 %v309_v15, %v513_v11  ;;  %p602_p3 = por %p601_p2, %p600_p1 }
  0x1f   : > { %v322_v21 = vmax.f32 %v315_v17, %v516_v13  ;;  %p598_p0 = pneg %p597_p13 }
  0x20   : > { %v323_v22 = vmax.f32 %v316_v19, %v517_v16 }
  0x21   : > { %v332_v23 = vadd.f32 %v330_v18, %v322_v21  ;;  %p603_p5 = pnand %p602_p3, %p598_p0 }
  0x22   : > { %v333_v25 = vadd.f32 %v331_v20, %v323_v22 }
  0x23   : > { %v334_v26 = vmax.f32 %v332_v23, 0.0 }
  0x24   : > { %v335_v28 = vmax.f32 %v333_v25, 0.0 }
  0x25   : > { %v338_v29 = vadd.f32 %v336_v24, %v334_v26 }
  0x26   : > { %v339_v30 = vadd.f32 %v337_v27, %v335_v28 }
  0x27   : > { %340 = vst [vmem:[%s267_s8] sm:$0xff] %v338_v29 }
  0x28   : > { %341 = vst [vmem:[%s267_s8 + $0x8] sm:$0xff] %v339_v30 }
  0x29   : > { %606 = shalt.err (!%p603_p5)
}
  0x2a   : > { %s659_s12 = smov 128   ;;  %s660_s26 = smov 8  }
  0x2b   : > { %521 = dma.vmem_to_hbm [thread:$0]  (%p726_p4), %s358_s9, 256, %s360_s18, %s343_s30, %s659_s12, %s659_s12, %s660_s26  }
  0x2c PF: > { %p527_p6 = scmp.ge.s32.totalorder %s657_s20, 2  ;;  %s374_s29 = sand.u32 1, %s637_s15  }
  0x2d   : > { %s375_s5 = scalar_lea.sflag [#allocation3], %s374_s29 }
  0x2e   : > { %p524_p7 = pnand %p527_p6, %p733_p8 }
  0x30   : > { %p525_p9 = pneg %p524_p7 }
  0x32   : > { %632 = dma.done.wait (%p525_p9), %s375_s5, 256  }
  0x33   : > { %634 = vsyncadd (%p525_p9), %s375_s5, 4294967040  ;;  %s17_s20 = sadd.s32 1, %s657_s20   ;;  %s807_s15 = smov %s641_s16 }
  0x34   : > { %p14_p10 = scmp.ge.s32.totalorder %s17_s20, 4   ;;  %s808_s16 = smov %s645_s17 }
  0x35   : > { %s809_s17 = smov %s739_s28  ;;  %s810_s18 = smov %s653_s19 }
  0x36   : > { %s811_s19 = smov %s813_s23  ;;  %16 = sbr.rel (!%p14_p10) target bundleno = 4 (0x4), region = 80 }
  0x3b   :  { %381 = vsyncpa [#allocation3], 1 }
  0x3c   :  { %383 = vsyncpa [#allocation3 + $0x1], 1 }

</bundles_post_ra>
